<compile_context>
chip_gen: v7x
topology: tpu7x:2x2x1
jax: 0.10.0
libtpu: 0.0.40
codegen_flags: <defaults>
</compile_context>

<pallas_src>
import functools

import jax
import jax.numpy as jnp
from jax.experimental import pallas as pl
from jax.experimental.pallas import tpu as pltpu


def _round_up(x, m):
    return ((x + m - 1) // m) * m


def _bag_loss_kernel(y_ref, lbl_ref, out_ref, *, B, N, TB, TN):
    # y_ref:   (TB, TN) tile of predictions: bags on sublanes, instances on lanes
    # lbl_ref: (TB, 1)  bag labels (resident across the N grid axis)
    # out_ref: (TB, 1)  f32; doubles as the running per-bag-min accumulator and
    #                   is overwritten with the per-bag BCE at the last N step.
    b = pl.program_id(0)
    n = pl.program_id(1)
    n_last = pl.num_programs(1) - 1

    @pl.when(n == 0)
    def _init():
        out_ref[...] = jnp.full(out_ref.shape, jnp.inf, dtype=out_ref.dtype)

    # Stream the tile in its stored dtype (bf16 stays bf16 over HBM); widen in
    # registers only.  VALU/XLU have large slack in this HBM-bound kernel.
    y = y_ref[...].astype(jnp.float32)
    if N % TN != 0:
        # Ragged tail tile on the instance axis: out-of-range lanes hold
        # unspecified data -> mask to +inf so they never win the min.
        col = n * TN + jax.lax.broadcasted_iota(jnp.int32, (TB, TN), 1)
        y = jnp.where(col < N, y, jnp.inf)
    tile_min = jnp.min(y, axis=1, keepdims=True)            # (TB, 1), XLU reduce
    out_ref[...] = jnp.minimum(out_ref[...], tile_min)       # VPU fold

    @pl.when(n == n_last)
    def _finalize():
        p = out_ref[...]                                      # (TB, 1) per-bag min
        lbl = lbl_ref[...].astype(jnp.float32)
        if B % TB != 0:
            # Ragged tail tile on the bag axis: keep the math finite on dead
            # sublanes (their writes are dropped by Pallas anyway, but this
            # keeps NaN checkers / future fused reductions happy).
            row = b * TB + jax.lax.broadcasted_iota(jnp.int32, (TB, 1), 0)
            valid = row < B
            p = jnp.where(valid, p, 0.5)
            lbl = jnp.where(valid, lbl, 0.0)
        # BCELoss with PyTorch's log clamp at -100.
        log_p = jnp.maximum(jnp.log(p), -100.0)
        log_1mp = jnp.maximum(jnp.log(1.0 - p), -100.0)
        out_ref[...] = -(lbl * log_p + (1.0 - lbl) * log_1mp)


def bag_loss(y_pred, label, *, tb=512, tn=2048):
    """y_pred: (B, N) probabilities in (0, 1); label: (B,) labels in {0, 1}.

    tb: bag-axis (sublane) tile; must be a multiple of 8 when B > tb.
    tn: instance-axis (lane) tile; must be a multiple of 128 when N > tn.
    Defaults give a 4 MiB f32 tile (8 MiB double-buffered): fits v5e's 16 MiB
    scoped VMEM and leaves headroom for both v7x TensorCores.
    """
    B, N = y_pred.shape
    label2d = label.reshape(B, 1).astype(jnp.float32)

    # Instance (lane) tile: multiple of 128, or the full N when it fits.
    if N > tn:
        assert tn % 128 == 0, "tn must be a multiple of 128 when N > tn"
        TN = tn
    else:
        TN = N
    # Bag (sublane) tile: multiple of 8, or the full B when B < 8.  When the
    # whole bag axis would fit in a single tile we still split it in two so the
    # "parallel" grid axis has >= 2 tiles (keeps both v7x TensorCores busy).
    if B > tb:
        assert tb % 8 == 0, "tb must be a multiple of 8 when B > tb"
        TB = tb
    else:
        TB = min(B, max(8, _round_up(pl.cdiv(B, 2), 8)))

    grid = (pl.cdiv(B, TB), pl.cdiv(N, TN))
    kernel = functools.partial(_bag_loss_kernel, B=B, N=N, TB=TB, TN=TN)

    per_bag = pl.pallas_call(
        kernel,
        out_shape=jax.ShapeDtypeStruct((B, 1), jnp.float32),
        grid=grid,
        in_specs=[
            pl.BlockSpec((TB, TN), lambda b, n: (b, n)),   # y_pred, native layout
            pl.BlockSpec((TB, 1), lambda b, n: (b, 0)),    # labels (resident)
        ],
        out_specs=pl.BlockSpec((TB, 1), lambda b, n: (b, 0)),
        compiler_params=pltpu.CompilerParams(
            dimension_semantics=("parallel", "arbitrary")),
    )(y_pred, label2d)

    # Output is exactly (B, 1): no padded lanes to slice away.  Tiny mean is
    # left to XLA.
    return jnp.mean(per_bag)


def bag_loss_ref(y_pred, label):
    """Pure-JAX reference for verification (also the right choice when this
    loss is simply fused into the surrounding XLA graph at tiny sizes)."""
    min_p = jnp.min(y_pred.astype(jnp.float32), axis=1)
    lbl = label.astype(jnp.float32)
    log_p = jnp.maximum(jnp.log(min_p), -100.0)
    log_1mp = jnp.maximum(jnp.log(1.0 - min_p), -100.0)
    return jnp.mean(-(lbl * log_p + (1.0 - lbl) * log_1mp))


if __name__ == "__main__":
    key = jax.random.PRNGKey(0)
    k1, k2 = jax.random.split(key)

    # Small shape consistent with the module: 8 bags x 16 instances.
    B, N = 8, 16
    y_pred = jax.nn.sigmoid(jax.random.normal(k1, (B, N), dtype=jnp.float32))
    label = jax.random.bernoulli(k2, 0.5, (B,)).astype(jnp.float32)

    loss = jax.block_until_ready(bag_loss(y_pred, label))
    ref = bag_loss_ref(y_pred, label)
    assert jnp.allclose(loss, ref, atol=1e-5, rtol=1e-5), (loss, ref)

    # Grid-exercising checks: bf16 inputs, ragged tails on both axes.
    k3, k4 = jax.random.split(k2)
    B2, N2 = 300, 200
    y2 = jax.nn.sigmoid(jax.random.normal(k3, (B2, N2))).astype(jnp.bfloat16)
    l2 = jax.random.bernoulli(k4, 0.5, (B2,)).astype(jnp.float32)
    ref2 = bag_loss_ref(y2, l2)

    # Default tiles: 2 bag tiles (v7x path), single N tile, ragged bag tail.
    loss2 = jax.block_until_ready(bag_loss(y2, l2))
    assert jnp.allclose(loss2, ref2, atol=1e-4, rtol=1e-4), (loss2, ref2)

    # Small tiles: multi-step N reduction plus ragged tails on both axes.
    loss3 = jax.block_until_ready(bag_loss(y2, l2, tb=64, tn=128))
    assert jnp.allclose(loss3, ref2, atol=1e-4, rtol=1e-4), (loss3, ref2)

    print("KERNEL_OK")
</pallas_src>

<mosaic_0001>
module attributes {stable_mosaic.version = 11 : i64} {
  func.func @_bag_loss_kernel(%arg0: i32, %arg1: i32, %arg2: memref<8x16xf32, #tpu.memory_space<vmem>>, %arg3: memref<8x1xf32, #tpu.memory_space<vmem>>, %arg4: memref<8x1xf32, #tpu.memory_space<vmem>>) attributes {dimension_semantics = [#tpu.dimension_semantics<parallel>, #tpu.dimension_semantics<arbitrary>], iteration_bounds = array<i64: 1, 1>, scalar_prefetch = 0 : i64, scratch_operands = 0 : i64, tpu.core_type = #tpu.core_type<tc>, window_params = [{transform_indices = @transform_0, window_bounds = array<i64: 8, 16>}, {transform_indices = @transform_1, window_bounds = array<i64: 8, 1>}, {transform_indices = @transform_2, window_bounds = array<i64: 8, 1>}]} {
    %c0_i32 = arith.constant 0 : i32
    %0 = arith.cmpi eq, %arg1, %c0_i32 : i32
    %1 = arith.extui %0 : i1 to i32
    %c0_i32_0 = arith.constant 0 : i32
    %2 = arith.cmpi ne, %1, %c0_i32_0 : i32
    scf.if %2 {
      %cst_8 = arith.constant 0x7F800000 : f32
      %12 = vector.broadcast %cst_8 : f32 to vector<8x1xf32>
      %c0_9 = arith.constant 0 : index
      %c0_10 = arith.constant 0 : index
      %13 = vector.load %arg4[%c0_9, %c0_10] : memref<8x1xf32, #tpu.memory_space<vmem>>, vector<8x1xf32>
      tpu.vector_store %arg4[%c0_9, %c0_10], %12 {strides = array<i32>} : memref<8x1xf32, #tpu.memory_space<vmem>>, vector<8x1xf32>,
    } else {
    }
    %c0 = arith.constant 0 : index
    %c0_1 = arith.constant 0 : index
    %3 = vector.load %arg2[%c0, %c0_1] : memref<8x16xf32, #tpu.memory_space<vmem>>, vector<8x16xf32>
    %cst = arith.constant dense<0x7F800000> : vector<8xf32>
    %4 = vector.multi_reduction <minimumf>, %3, %cst [1] : vector<8x16xf32> to vector<8xf32>
    %5 = vector.shape_cast %4 : vector<8xf32> to vector<8x1xf32>
    %c0_2 = arith.constant 0 : index
    %c0_3 = arith.constant 0 : index
    %6 = vector.load %arg4[%c0_2, %c0_3] : memref<8x1xf32, #tpu.memory_space<vmem>>, vector<8x1xf32>
    %7 = arith.minimumf %6, %5 : vector<8x1xf32>
    %c0_4 = arith.constant 0 : index
    %c0_5 = arith.constant 0 : index
    %8 = vector.load %arg4[%c0_4, %c0_5] : memref<8x1xf32, #tpu.memory_space<vmem>>, vector<8x1xf32>
    tpu.vector_store %arg4[%c0_4, %c0_5], %7 {strides = array<i32>} : memref<8x1xf32, #tpu.memory_space<vmem>>, vector<8x1xf32>,
    %c0_i32_6 = arith.constant 0 : i32
    %9 = arith.cmpi eq, %arg1, %c0_i32_6 : i32
    %10 = arith.extui %9 : i1 to i32
    %c0_i32_7 = arith.constant 0 : i32
    %11 = arith.cmpi ne, %10, %c0_i32_7 : i32
    scf.if %11 {
      %c0_8 = arith.constant 0 : index
      %c0_9 = arith.constant 0 : index
      %12 = vector.load %arg4[%c0_8, %c0_9] : memref<8x1xf32, #tpu.memory_space<vmem>>, vector<8x1xf32>
      %c0_10 = arith.constant 0 : index
      %c0_11 = arith.constant 0 : index
      %13 = vector.load %arg3[%c0_10, %c0_11] : memref<8x1xf32, #tpu.memory_space<vmem>>, vector<8x1xf32>
      %14 = math.log %12 : vector<8x1xf32>
      %cst_12 = arith.constant -1.000000e+02 : f32
      %15 = vector.broadcast %cst_12 : f32 to vector<8x1xf32>
      %16 = arith.maximumf %14, %15 : vector<8x1xf32>
      %cst_13 = arith.constant 1.000000e+00 : f32
      %17 = vector.broadcast %cst_13 : f32 to vector<8x1xf32>
      %18 = arith.subf %17, %12 : vector<8x1xf32>
      %19 = math.log %18 : vector<8x1xf32>
      %cst_14 = arith.constant -1.000000e+02 : f32
      %20 = vector.broadcast %cst_14 : f32 to vector<8x1xf32>
      %21 = arith.maximumf %19, %20 : vector<8x1xf32>
      %22 = arith.mulf %13, %16 : vector<8x1xf32>
      %cst_15 = arith.constant 1.000000e+00 : f32
      %23 = vector.broadcast %cst_15 : f32 to vector<8x1xf32>
      %24 = arith.subf %23, %13 : vector<8x1xf32>
      %25 = arith.mulf %24, %21 : vector<8x1xf32>
      %26 = arith.addf %22, %25 : vector<8x1xf32>
      %cst_16 = arith.constant 0.000000e+00 : f32
      %27 = vector.broadcast %cst_16 : f32 to vector<8x1xf32>
      %28 = arith.subf %27, %26 : vector<8x1xf32>
      %c0_17 = arith.constant 0 : index
      %c0_18 = arith.constant 0 : index
      %29 = vector.load %arg4[%c0_17, %c0_18] : memref<8x1xf32, #tpu.memory_space<vmem>>, vector<8x1xf32>
      tpu.vector_store %arg4[%c0_17, %c0_18], %28 {strides = array<i32>} : memref<8x1xf32, #tpu.memory_space<vmem>>, vector<8x1xf32>,
    } else {
    }
    return
  }
  func.func @transform_0(%arg0: i32, %arg1: i32) -> (i32, i32) {
    %c0_i32 = arith.constant 0 : i32
    return %arg0, %arg1 : i32, i32
  }
  func.func @transform_1(%arg0: i32, %arg1: i32) -> (i32, i32) {
    %c0_i32 = arith.constant 0 : i32
    %c0_i32_0 = arith.constant 0 : i32
    return %arg0, %c0_i32 : i32, i32
  }
  func.func @transform_2(%arg0: i32, %arg1: i32) -> (i32, i32) {
    %c0_i32 = arith.constant 0 : i32
    %c0_i32_0 = arith.constant 0 : i32
    return %arg0, %c0_i32 : i32, i32
  }
}

</mosaic_0001>

<bundles_post_ra>
// kernel: tpu_custom_call.1
= control target key start
LH: loop header
LB: loop body
LE: loop exit
PB: predicated region body
PF: predicated region fallthrough
CT: control target
= control target key end

     0   :  { %vm18_vm0 = vcmask 130048   ;;  %vm15_vm1 = vcmask 7168   ;;  %v53_v1 = vmov inf   ;;  %s93_s0 = inlined_call_operand.vmem [shape: f32[8,16], index: 0, kind: input, shape index: {}]   ;;  %s94_s2 = inlined_call_operand.vmem [shape: f32[8,1], index: 2, kind: output, shape index: {}]   ;;  %s95_s1 = inlined_call_operand.vmem [shape: f32[8,1], index: 1, kind: input, shape index: {}]  }
   0x1   :  { %v17_v0 = vld [vmem:[%s93_s0] sm:$0xff]  ;;  %16 = vst.msk [vmem:[%s94_s2] sm:$0xff] %vm15_vm1, %v53_v1 }
   0x2   :  { %v19_v2 = vsel %vm18_vm0, %v17_v0, inf  ;;  %v30_v9 = vld [vmem:[%s95_s1] sm:$0xff] }
   0x3   :  { %20 = vmin.xlane.f32.xlu0 %v19_v2  ;;  %v39_v14 = vsub.f32 1.0, %v30_v9 }
   0x8   :  { %v22_v3 = vld [vmem:[%s94_s2] sm:$0xff] }
  0x90   :  { %v21_v4 = vpop.xlane.xlu0 %20 }
  0x91   :  { %v23_v5 = vmin.f32 %v22_v3, %v21_v4 }
  0x93   :  { %25 = vst.msk [vmem:[%s94_s2] sm:$0xff] %vm15_vm1, %v23_v5 }
  0x9a   :  { %v29_v6 = vld [vmem:[%s94_s2] sm:$0xff] }
  0x9b   :  { %49 = vlog2.f32 %v29_v6  ;;  %v34_v7 = vsub.f32 1.0, %v29_v6 }
  0x9d   :  { %51 = vlog2.f32 %v34_v7 }
  0xa5   :  { %v50_v8 = vpop.eup %49 }
  0xa6   :  { %v32_v10 = vmul.f32 0.6931472, %v50_v8 }
  0xa7   :  { %v52_v11 = vpop.eup %51 }
  0xa8   :  { %v33_v12 = vmax.f32 %v32_v10, -100.0  ;;  %v36_v13 = vmul.f32 0.6931472, %v52_v11 }
  0xaa   :  { %v37_v15 = vmax.f32 %v36_v13, -100.0  ;;  %v38_v16 = vmul.f32 %v33_v12, %v30_v9 }
  0xac   :  { %v40_v17 = vmul.f32 %v39_v14, %v37_v15 }
  0xae   :  { %v41_v18 = vadd.f32 %v40_v17, %v38_v16 }
  0xb0   :  { %v42_v19 = vsub.f32 0.0, %v41_v18 }
  0xb2   :  { %43 = vst.msk [vmem:[%s94_s2] sm:$0xff] %vm15_vm1, %v42_v19 }

</bundles_post_ra>
